<compile_context>
chip_gen: v6e
topology: v6e:2x2x1
jax: 0.10.0
libtpu: 0.0.40
codegen_flags: <defaults>
</compile_context>

<pallas_src>
import functools

import jax
import jax.numpy as jnp
from jax.experimental import pallas as pl
from jax.experimental.pallas import tpu as pltpu


# ----------------------------------------------------------------------------
# helpers
# ----------------------------------------------------------------------------
def _round_up(x, m):
    return ((x + m - 1) // m) * m


def _choose_tile(size, target, mult):
    """Pick a tile that is a multiple of `mult` and divides the padded size."""
    padded_min = _round_up(size, mult)
    tile = min(_round_up(target, mult), padded_min)
    padded = _round_up(size, tile)
    return tile, padded


def _pad2d(x, rows, cols):
    r, c = x.shape
    if r == rows and c == cols:
        return x
    return jnp.pad(x, ((0, rows - r), (0, cols - c)))


_VMEM_LIMIT = 64 * 1024 * 1024  # <= physical VMEM on v5e/v6e/v7x


# ----------------------------------------------------------------------------
# LayerNorm kernel
# ----------------------------------------------------------------------------
def _layernorm_kernel(x_ref, g_ref, b_ref, o_ref, *, true_dim, eps):
    x = x_ref[...].astype(jnp.float32)
    dim_p = x.shape[-1]
    inv_d = 1.0 / true_dim
    if true_dim < dim_p:
        col = jax.lax.broadcasted_iota(jnp.int32, x.shape, 1)
        mask = col < true_dim
        x = jnp.where(mask, x, 0.0)
        mean = jnp.sum(x, axis=-1, keepdims=True) * inv_d
        diff = jnp.where(mask, x - mean, 0.0)
    else:
        mean = jnp.sum(x, axis=-1, keepdims=True) * inv_d
        diff = x - mean
    var = jnp.sum(diff * diff, axis=-1, keepdims=True) * inv_d
    inv = jax.lax.rsqrt(var + eps)
    y = diff * inv * g_ref[...].astype(jnp.float32) + b_ref[...].astype(jnp.float32)
    o_ref[...] = y.astype(o_ref.dtype)


def layernorm(x2d, gamma, beta, *, eps=1e-5, tm_target=256):
    M, D = x2d.shape
    tm, Mp = _choose_tile(M, tm_target, 8)
    Dp = _round_up(D, 128)
    xp = _pad2d(x2d, Mp, Dp)
    gp = _pad2d(gamma.reshape(1, D), 1, Dp)
    bp = _pad2d(beta.reshape(1, D), 1, Dp)

    kernel = functools.partial(_layernorm_kernel, true_dim=D, eps=eps)
    out = pl.pallas_call(
        kernel,
        out_shape=jax.ShapeDtypeStruct((Mp, Dp), x2d.dtype),
        grid_spec=pltpu.PrefetchScalarGridSpec(
            num_scalar_prefetch=0,
            grid=(Mp // tm,),
            in_specs=[
                pl.BlockSpec((tm, Dp), lambda i: (i, 0)),
                pl.BlockSpec((1, Dp), lambda i: (0, 0)),
                pl.BlockSpec((1, Dp), lambda i: (0, 0)),
            ],
            out_specs=pl.BlockSpec((tm, Dp), lambda i: (i, 0)),
        ),
        compiler_params=pltpu.CompilerParams(
            dimension_semantics=("parallel",),
            vmem_limit_bytes=_VMEM_LIMIT),
    )(xp, gp, bp)
    return out[:M, :D]


# ----------------------------------------------------------------------------
# Tiled matmul kernels (bias, optional fused residual)
# ----------------------------------------------------------------------------
def _matmul_kernel(x_ref, w_ref, b_ref, o_ref, acc_ref):
    k = pl.program_id(2)

    @pl.when(k == 0)
    def _():
        acc_ref[...] = jnp.zeros_like(acc_ref)

    acc_ref[...] += jnp.dot(x_ref[...], w_ref[...],
                            preferred_element_type=jnp.float32)

    @pl.when(k == pl.num_programs(2) - 1)
    def _():
        o_ref[...] = (acc_ref[...] +
                      b_ref[...].astype(jnp.float32)).astype(o_ref.dtype)


def _matmul_res_kernel(x_ref, w_ref, b_ref, r_ref, o_ref, acc_ref):
    k = pl.program_id(2)

    @pl.when(k == 0)
    def _():
        acc_ref[...] = jnp.zeros_like(acc_ref)

    acc_ref[...] += jnp.dot(x_ref[...], w_ref[...],
                            preferred_element_type=jnp.float32)

    @pl.when(k == pl.num_programs(2) - 1)
    def _():
        o_ref[...] = (acc_ref[...] + b_ref[...].astype(jnp.float32) +
                      r_ref[...].astype(jnp.float32)).astype(o_ref.dtype)


def linear(x2d, w, b=None, residual=None, *,
           tm_target=256, tn_target=256, tk_target=512):
    M, K = x2d.shape
    Kw, N = w.shape
    assert K == Kw
    tm, Mp = _choose_tile(M, tm_target, 8)
    tn, Np = _choose_tile(N, tn_target, 128)
    tk, Kp = _choose_tile(K, tk_target, 128)

    xp = _pad2d(x2d, Mp, Kp)
    wp = _pad2d(w, Kp, Np)
    bp = (jnp.zeros((1, Np), x2d.dtype) if b is None
          else _pad2d(b.reshape(1, N), 1, Np))

    in_specs = [
        pl.BlockSpec((tm, tk), lambda i, j, k: (i, k)),
        pl.BlockSpec((tk, tn), lambda i, j, k: (k, j)),
        pl.BlockSpec((1, tn), lambda i, j, k: (0, j)),
    ]
    args = [xp, wp, bp]
    kernel = _matmul_kernel
    if residual is not None:
        rp = _pad2d(residual, Mp, Np)
        in_specs.append(pl.BlockSpec((tm, tn), lambda i, j, k: (i, j)))
        args.append(rp)
        kernel = _matmul_res_kernel

    itemsize = x2d.dtype.itemsize
    cost = pl.CostEstimate(
        flops=2 * Mp * Np * Kp,
        transcendentals=0,
        bytes_accessed=(Mp * Kp + Kp * Np + Mp * Np) * itemsize)

    out = pl.pallas_call(
        kernel,
        out_shape=jax.ShapeDtypeStruct((Mp, Np), x2d.dtype),
        grid_spec=pltpu.PrefetchScalarGridSpec(
            num_scalar_prefetch=0,
            grid=(Mp // tm, Np // tn, Kp // tk),
            in_specs=in_specs,
            out_specs=pl.BlockSpec((tm, tn), lambda i, j, k: (i, j)),
            scratch_shapes=[pltpu.VMEM((tm, tn), jnp.float32)],
        ),
        compiler_params=pltpu.CompilerParams(
            dimension_semantics=("parallel", "parallel", "arbitrary"),
            vmem_limit_bytes=_VMEM_LIMIT),
        cost_estimate=cost,
    )(*args)
    return out[:M, :N]


# ----------------------------------------------------------------------------
# Fused FeedForward kernel: Linear -> GELU(erf) -> Linear (+ bias, + residual)
# Grid = (token tiles, hidden tiles); hidden (reduction) axis last.
# ----------------------------------------------------------------------------
def _ffn_kernel(x_ref, w1_ref, b1_ref, w2_ref, b2_ref, r_ref, o_ref, acc_ref):
    k = pl.program_id(1)

    @pl.when(k == 0)
    def _():
        acc_ref[...] = jnp.zeros_like(acc_ref)

    # First linear (this hidden slice) + bias, f32 accumulation on the MXU.
    h = jnp.dot(x_ref[...], w1_ref[...], preferred_element_type=jnp.float32)
    h = h + b1_ref[...].astype(jnp.float32)
    # Exact GELU (erf formulation) = PyTorch nn.GELU() default.
    h = 0.5 * h * (1.0 + jax.lax.erf(h * 0.7071067811865475))
    # Dropout(p=0.0) is a no-op.
    # Second linear: accumulate this hidden slice's contribution.
    acc_ref[...] += jnp.dot(h.astype(w2_ref.dtype), w2_ref[...],
                            preferred_element_type=jnp.float32)

    @pl.when(k == pl.num_programs(1) - 1)
    def _():
        o_ref[...] = (acc_ref[...] + b2_ref[...].astype(jnp.float32) +
                      r_ref[...].astype(jnp.float32)).astype(o_ref.dtype)


def feedforward(x2d, w1, b1, w2, b2, residual, *, tm_target=256, th_target=512):
    M, D = x2d.shape
    Dw, H = w1.shape
    assert D == Dw and w2.shape == (H, D)
    tm, Mp = _choose_tile(M, tm_target, 8)
    th, Hp = _choose_tile(H, th_target, 128)
    Dp = _round_up(D, 128)

    xp = _pad2d(x2d, Mp, Dp)
    w1p = _pad2d(w1, Dp, Hp)
    b1p = _pad2d(b1.reshape(1, H), 1, Hp)
    w2p = _pad2d(w2, Hp, Dp)
    b2p = _pad2d(b2.reshape(1, D), 1, Dp)
    rp = _pad2d(residual, Mp, Dp)

    itemsize = x2d.dtype.itemsize
    cost = pl.CostEstimate(
        flops=2 * Mp * Dp * Hp * 2,
        transcendentals=Mp * Hp,
        bytes_accessed=(2 * Mp * Dp + 2 * Dp * Hp + Mp * Dp) * itemsize)

    out = pl.pallas_call(
        _ffn_kernel,
        out_shape=jax.ShapeDtypeStruct((Mp, Dp), x2d.dtype),
        grid_spec=pltpu.PrefetchScalarGridSpec(
            num_scalar_prefetch=0,
            grid=(Mp // tm, Hp // th),
            in_specs=[
                pl.BlockSpec((tm, Dp), lambda i, k: (i, 0)),   # x tile
                pl.BlockSpec((Dp, th), lambda i, k: (0, k)),   # w1 column slice
                pl.BlockSpec((1, th), lambda i, k: (0, k)),    # b1 slice
                pl.BlockSpec((th, Dp), lambda i, k: (k, 0)),   # w2 row slice
                pl.BlockSpec((1, Dp), lambda i, k: (0, 0)),    # b2
                pl.BlockSpec((tm, Dp), lambda i, k: (i, 0)),   # residual
            ],
            out_specs=pl.BlockSpec((tm, Dp), lambda i, k: (i, 0)),
            scratch_shapes=[pltpu.VMEM((tm, Dp), jnp.float32)],
        ),
        compiler_params=pltpu.CompilerParams(
            dimension_semantics=("parallel", "arbitrary"),
            vmem_limit_bytes=_VMEM_LIMIT),
        cost_estimate=cost,
    )(xp, w1p, b1p, w2p, b2p, rp)
    return out[:M, :D]


# ----------------------------------------------------------------------------
# Attention core: softmax(Q K^T * scale) V, one grid step per (batch*head).
# ----------------------------------------------------------------------------
def _attn_kernel(q_ref, k_ref, v_ref, o_ref, *, scale, seq_len):
    q = q_ref[0].astype(jnp.float32)          # (Sp, Dhp)
    k = k_ref[0].astype(jnp.float32)
    v = v_ref[0]
    s = jnp.dot(q, k.T, preferred_element_type=jnp.float32) * scale  # (Sp, Sp)
    if seq_len < s.shape[-1]:                  # mask padded key positions
        col = jax.lax.broadcasted_iota(jnp.int32, s.shape, 1)
        s = jnp.where(col < seq_len, s, -1e30)
    s = s - jnp.max(s, axis=-1, keepdims=True)
    p = jnp.exp(s)
    p = p / jnp.sum(p, axis=-1, keepdims=True)
    o = jnp.dot(p.astype(v.dtype), v, preferred_element_type=jnp.float32)
    o_ref[0] = o.astype(o_ref.dtype)


def attention_core(q, k, v, scale):
    # q, k, v: (B, H, S, Dh)
    # TODO(synk): switch to a flash-style tiled (q-tile, kv-tile) online-softmax
    # kernel for long sequences; the full-S block here targets short sequences.
    B, H, S, Dh = q.shape
    Sp = _round_up(S, 8)
    Dhp = _round_up(Dh, 128)

    def prep(t):
        t = jnp.pad(t, ((0, 0), (0, 0), (0, Sp - S), (0, Dhp - Dh)))
        return t.reshape(B * H, Sp, Dhp)

    qp, kp, vp = prep(q), prep(k), prep(v)
    kernel = functools.partial(_attn_kernel, scale=scale, seq_len=S)
    out = pl.pallas_call(
        kernel,
        out_shape=jax.ShapeDtypeStruct((B * H, Sp, Dhp), q.dtype),
        grid_spec=pltpu.PrefetchScalarGridSpec(
            num_scalar_prefetch=0,
            grid=(B * H,),
            in_specs=[pl.BlockSpec((1, Sp, Dhp), lambda i: (i, 0, 0))] * 3,
            out_specs=pl.BlockSpec((1, Sp, Dhp), lambda i: (i, 0, 0)),
        ),
        compiler_params=pltpu.CompilerParams(
            dimension_semantics=("parallel",),
            vmem_limit_bytes=_VMEM_LIMIT),
    )(qp, kp, vp)
    return out.reshape(B, H, Sp, Dhp)[:, :, :S, :Dh]


# ----------------------------------------------------------------------------
# Full Transformer forward
# ----------------------------------------------------------------------------
def transformer_forward(x, params, *, heads, dim_head):
    B, S, dim = x.shape
    N = B * S
    inner_dim = heads * dim_head
    scale = dim_head ** (-0.5)
    x2d = x.reshape(N, dim)

    for layer in params["layers"]:
        # ---- PreNorm + Attention + residual ----
        h = layernorm(x2d, layer["ln1_g"], layer["ln1_b"])
        qkv = linear(h, layer["w_qkv"])                       # bias=False
        q, k, v = jnp.split(qkv, 3, axis=-1)

        def to_heads(t):
            return t.reshape(B, S, heads, dim_head).transpose(0, 2, 1, 3)

        o = attention_core(to_heads(q), to_heads(k), to_heads(v), scale)
        o2d = o.transpose(0, 2, 1, 3).reshape(N, inner_dim)
        if layer["w_o"] is not None:                          # project_out
            x2d = linear(o2d, layer["w_o"], layer["b_o"], residual=x2d)
        else:                                                 # nn.Identity
            x2d = o2d + x2d

        # ---- PreNorm + FeedForward + residual ----
        h = layernorm(x2d, layer["ln2_g"], layer["ln2_b"])
        x2d = feedforward(h, layer["w1"], layer["b1"],
                          layer["w2"], layer["b2"], residual=x2d)

    x2d = layernorm(x2d, params["norm_g"], params["norm_b"])
    return x2d.reshape(B, S, dim)


# ----------------------------------------------------------------------------
# Parameter init (mimics nn.Linear / nn.LayerNorm defaults)
# ----------------------------------------------------------------------------
def init_transformer_params(key, dim, depth, heads, dim_head, mlp_dim,
                            dtype=jnp.float32):
    inner_dim = heads * dim_head
    project_out = not (heads == 1 and dim_head == dim)

    def u(k, shape, fan_in):
        bound = 1.0 / (fan_in ** 0.5)
        return jax.random.uniform(k, shape, dtype, -bound, bound)

    layers = []
    for _ in range(depth):
        key, *ks = jax.random.split(key, 9)
        layer = {
            "ln1_g": jnp.ones((dim,), dtype), "ln1_b": jnp.zeros((dim,), dtype),
            "w_qkv": u(ks[0], (dim, inner_dim * 3), dim),
            "w_o": u(ks[1], (inner_dim, dim), inner_dim) if project_out else None,
            "b_o": u(ks[2], (dim,), inner_dim) if project_out else None,
            "ln2_g": jnp.ones((dim,), dtype), "ln2_b": jnp.zeros((dim,), dtype),
            "w1": u(ks[3], (dim, mlp_dim), dim),
            "b1": u(ks[4], (mlp_dim,), dim),
            "w2": u(ks[5], (mlp_dim, dim), mlp_dim),
            "b2": u(ks[6], (dim,), mlp_dim),
        }
        layers.append(layer)
    return {"layers": layers,
            "norm_g": jnp.ones((dim,), dtype),
            "norm_b": jnp.zeros((dim,), dtype)}


# ----------------------------------------------------------------------------
# Pure-JAX reference (high-precision dots) for correctness check
# ----------------------------------------------------------------------------
def transformer_reference(x, params, *, heads, dim_head):
    B, S, dim = x.shape
    scale = dim_head ** (-0.5)
    hp = jax.lax.Precision.HIGHEST
    mm = functools.partial(jnp.matmul, precision=hp)

    def ln(t, g, b, eps=1e-5):
        m = jnp.mean(t, -1, keepdims=True)
        v = jnp.mean((t - m) ** 2, -1, keepdims=True)
        return (t - m) * jax.lax.rsqrt(v + eps) * g + b

    h = x
    for layer in params["layers"]:
        y = ln(h, layer["ln1_g"], layer["ln1_b"])
        qkv = mm(y, layer["w_qkv"])
        q, k, v = jnp.split(qkv, 3, axis=-1)

        def to_heads(t):
            return t.reshape(B, S, heads, dim_head).transpose(0, 2, 1, 3)

        q, k, v = map(to_heads, (q, k, v))
        dots = jnp.einsum("bhid,bhjd->bhij", q, k, precision=hp) * scale
        attn = jax.nn.softmax(dots, axis=-1)
        o = jnp.einsum("bhij,bhjd->bhid", attn, v, precision=hp)
        o = o.transpose(0, 2, 1, 3).reshape(B, S, heads * dim_head)
        if layer["w_o"] is not None:
            o = mm(o, layer["w_o"]) + layer["b_o"]
        h = o + h

        y = ln(h, layer["ln2_g"], layer["ln2_b"])
        g = mm(y, layer["w1"]) + layer["b1"]
        g = 0.5 * g * (1.0 + jax.lax.erf(g * 0.7071067811865475))
        h = mm(g, layer["w2"]) + layer["b2"] + h
    return ln(h, params["norm_g"], params["norm_b"])


if __name__ == "__main__":
    key = jax.random.PRNGKey(0)
    kx, kp = jax.random.split(key)

    B, S = 2, 8
    dim, depth, heads, dim_head, mlp_dim = 32, 2, 2, 16, 64

    x = jax.random.normal(kx, (B, S, dim), jnp.float32)
    params = init_transformer_params(kp, dim, depth, heads, dim_head, mlp_dim)

    fwd = jax.jit(functools.partial(transformer_forward,
                                    heads=heads, dim_head=dim_head))
    out = jax.block_until_ready(fwd(x, params))

    ref = transformer_reference(x, params, heads=heads, dim_head=dim_head)
    assert out.shape == ref.shape
    err = float(jnp.max(jnp.abs(out - ref)))
    assert jnp.allclose(out, ref, atol=1e-3, rtol=1e-3), f"max abs err {err}"

    print("KERNEL_OK")
</pallas_src>

<mosaic_0001>
module attributes {stable_mosaic.version = 11 : i64} {
  func.func @_layernorm_kernel(%arg0: i32, %arg1: memref<16x128xf32, #tpu.memory_space<vmem>>, %arg2: memref<1x128xf32, #tpu.memory_space<vmem>>, %arg3: memref<1x128xf32, #tpu.memory_space<vmem>>, %arg4: memref<16x128xf32, #tpu.memory_space<vmem>>) attributes {dimension_semantics = [#tpu.dimension_semantics<parallel>], iteration_bounds = array<i64: 1>, scalar_prefetch = 0 : i64, scratch_operands = 0 : i64, tpu.core_type = #tpu.core_type<tc>, window_params = [{transform_indices = @transform_0, window_bounds = array<i64: 16, 128>}, {pipeline_mode = #tpu.pipeline_mode<synchronous>, transform_indices = @transform_1, window_bounds = array<i64: 1, 128>}, {pipeline_mode = #tpu.pipeline_mode<synchronous>, transform_indices = @transform_2, window_bounds = array<i64: 1, 128>}, {transform_indices = @transform_3, window_bounds = array<i64: 16, 128>}]} {
    %c0 = arith.constant 0 : index
    %c0_0 = arith.constant 0 : index
    %0 = vector.load %arg1[%c0, %c0_0] : memref<16x128xf32, #tpu.memory_space<vmem>>, vector<16x128xf32>
    %1 = tpu.iota {dimensions = array<i32: 1>} : vector<16x128xi32>
    %c32_i32 = arith.constant 32 : i32
    %2 = vector.broadcast %c32_i32 : i32 to vector<16x128xi32>
    %3 = arith.cmpi slt, %1, %2 : vector<16x128xi32>
    %cst = arith.constant 0.000000e+00 : f32
    %4 = vector.broadcast %cst : f32 to vector<16x128xf32>
    %5 = arith.select %3, %0, %4 : vector<16x128xi1>, vector<16x128xf32>
    %cst_1 = arith.constant dense<0.000000e+00> : vector<16xf32>
    %6 = vector.multi_reduction <add>, %5, %cst_1 [1] : vector<16x128xf32> to vector<16xf32>
    %7 = vector.shape_cast %6 : vector<16xf32> to vector<16x1xf32>
    %cst_2 = arith.constant 3.125000e-02 : f32
    %8 = vector.broadcast %cst_2 : f32 to vector<16x1xf32>
    %9 = arith.mulf %7, %8 : vector<16x1xf32>
    %10 = vector.broadcast %9 : vector<16x1xf32> to vector<16x128xf32>
    %11 = arith.subf %5, %10 : vector<16x128xf32>
    %cst_3 = arith.constant 0.000000e+00 : f32
    %12 = vector.broadcast %cst_3 : f32 to vector<16x128xf32>
    %13 = arith.select %3, %11, %12 : vector<16x128xi1>, vector<16x128xf32>
    %14 = arith.mulf %13, %13 : vector<16x128xf32>
    %cst_4 = arith.constant dense<0.000000e+00> : vector<16xf32>
    %15 = vector.multi_reduction <add>, %14, %cst_4 [1] : vector<16x128xf32> to vector<16xf32>
    %16 = vector.shape_cast %15 : vector<16xf32> to vector<16x1xf32>
    %cst_5 = arith.constant 3.125000e-02 : f32
    %17 = vector.broadcast %cst_5 : f32 to vector<16x1xf32>
    %18 = arith.mulf %16, %17 : vector<16x1xf32>
    %cst_6 = arith.constant 9.99999974E-6 : f32
    %19 = vector.broadcast %cst_6 : f32 to vector<16x1xf32>
    %20 = arith.addf %18, %19 : vector<16x1xf32>
    %21 = math.rsqrt %20 : vector<16x1xf32>
    %22 = vector.broadcast %21 : vector<16x1xf32> to vector<16x128xf32>
    %23 = arith.mulf %13, %22 : vector<16x128xf32>
    %c0_7 = arith.constant 0 : index
    %c0_8 = arith.constant 0 : index
    %24 = vector.load %arg2[%c0_7, %c0_8] : memref<1x128xf32, #tpu.memory_space<vmem>>, vector<1x128xf32>
    %25 = vector.broadcast %24 : vector<1x128xf32> to vector<16x128xf32>
    %26 = arith.mulf %23, %25 : vector<16x128xf32>
    %c0_9 = arith.constant 0 : index
    %c0_10 = arith.constant 0 : index
    %27 = vector.load %arg3[%c0_9, %c0_10] : memref<1x128xf32, #tpu.memory_space<vmem>>, vector<1x128xf32>
    %28 = vector.broadcast %27 : vector<1x128xf32> to vector<16x128xf32>
    %29 = arith.addf %26, %28 : vector<16x128xf32>
    %c0_11 = arith.constant 0 : index
    %c0_12 = arith.constant 0 : index
    %30 = vector.load %arg4[%c0_11, %c0_12] : memref<16x128xf32, #tpu.memory_space<vmem>>, vector<16x128xf32>
    tpu.vector_store %arg4[%c0_11, %c0_12], %29 {strides = array<i32>} : memref<16x128xf32, #tpu.memory_space<vmem>>, vector<16x128xf32>,
    return
  }
  func.func @transform_0(%arg0: i32) -> (i32, i32) {
    %c0_i32 = arith.constant 0 : i32
    %c0_i32_0 = arith.constant 0 : i32
    return %arg0, %c0_i32 : i32, i32
  }
  func.func @transform_1(%arg0: i32) -> (i32, i32) {
    %c0_i32 = arith.constant 0 : i32
    %c0_i32_0 = arith.constant 0 : i32
    %c0_i32_1 = arith.constant 0 : i32
    return %c0_i32, %c0_i32_0 : i32, i32
  }
  func.func @transform_2(%arg0: i32) -> (i32, i32) {
    %c0_i32 = arith.constant 0 : i32
    %c0_i32_0 = arith.constant 0 : i32
    %c0_i32_1 = arith.constant 0 : i32
    return %c0_i32, %c0_i32_0 : i32, i32
  }
  func.func @transform_3(%arg0: i32) -> (i32, i32) {
    %c0_i32 = arith.constant 0 : i32
    %c0_i32_0 = arith.constant 0 : i32
    return %arg0, %c0_i32 : i32, i32
  }
}

module attributes {stable_mosaic.version = 11 : i64} {
  func.func @_matmul_kernel(%arg0: i32, %arg1: i32, %arg2: i32, %arg3: memref<16x128xf32, #tpu.memory_space<vmem>>, %arg4: memref<128x128xf32, #tpu.memory_space<vmem>>, %arg5: memref<1x128xf32, #tpu.memory_space<vmem>>, %arg6: memref<16x128xf32, #tpu.memory_space<vmem>>, %arg7: memref<16x128xf32, #tpu.memory_space<vmem>>) attributes {dimension_semantics = [#tpu.dimension_semantics<parallel>, #tpu.dimension_semantics<parallel>, #tpu.dimension_semantics<arbitrary>], iteration_bounds = array<i64: 1, 1, 1>, scalar_prefetch = 0 : i64, scratch_operands = 1 : i64, tpu.core_type = #tpu.core_type<tc>, window_params = [{transform_indices = @transform_0, window_bounds = array<i64: 16, 128>}, {transform_indices = @transform_1, window_bounds = array<i64: 128, 128>}, {transform_indices = @transform_2, window_bounds = array<i64: 1, 128>}, {transform_indices = @transform_3, window_bounds = array<i64: 16, 128>}]} {
    %c0_i32 = arith.constant 0 : i32
    %0 = arith.cmpi eq, %arg2, %c0_i32 : i32
    %1 = arith.extui %0 : i1 to i32
    %c0_i32_0 = arith.constant 0 : i32
    %2 = arith.cmpi ne, %1, %c0_i32_0 : i32
    scf.if %2 {
      %cst_10 = arith.constant 0.000000e+00 : f32
      %12 = vector.broadcast %cst_10 : f32 to vector<16x128xf32>
      %c0_11 = arith.constant 0 : index
      %c0_12 = arith.constant 0 : index
      %13 = vector.load %arg7[%c0_11, %c0_12] : memref<16x128xf32, #tpu.memory_space<vmem>>, vector<16x128xf32>
      tpu.vector_store %arg7[%c0_11, %c0_12], %12 {strides = array<i32>} : memref<16x128xf32, #tpu.memory_space<vmem>>, vector<16x128xf32>,
    } else {
    }
    %c0 = arith.constant 0 : index
    %c0_1 = arith.constant 0 : index
    %3 = vector.load %arg7[%c0, %c0_1] : memref<16x128xf32, #tpu.memory_space<vmem>>, vector<16x128xf32>
    %c0_2 = arith.constant 0 : index
    %c0_3 = arith.constant 0 : index
    %4 = vector.load %arg3[%c0_2, %c0_3] : memref<16x128xf32, #tpu.memory_space<vmem>>, vector<16x128xf32>
    %c0_4 = arith.constant 0 : index
    %c0_5 = arith.constant 0 : index
    %5 = vector.load %arg4[%c0_4, %c0_5] : memref<128x128xf32, #tpu.memory_space<vmem>>, vector<128x128xf32>
    %cst = arith.constant dense<0.000000e+00> : vector<16x128xf32>
    %6 = tpu.matmul %4, %5, %cst {dimension_numbers = #tpu.dot_dimension_numbers<[1], [0], [0], [1], [0, 0, 1, 1], [], []>} : vector<16x128xf32>, vector<128x128xf32>, vector<16x128xf32> -> vector<16x128xf32>
    %7 = arith.addf %3, %6 : vector<16x128xf32>
    %c0_6 = arith.constant 0 : index
    %c0_7 = arith.constant 0 : index
    %8 = vector.load %arg7[%c0_6, %c0_7] : memref<16x128xf32, #tpu.memory_space<vmem>>, vector<16x128xf32>
    tpu.vector_store %arg7[%c0_6, %c0_7], %7 {strides = array<i32>} : memref<16x128xf32, #tpu.memory_space<vmem>>, vector<16x128xf32>,
    %c0_i32_8 = arith.constant 0 : i32
    %9 = arith.cmpi eq, %arg2, %c0_i32_8 : i32
    %10 = arith.extui %9 : i1 to i32
    %c0_i32_9 = arith.constant 0 : i32
    %11 = arith.cmpi ne, %10, %c0_i32_9 : i32
    scf.if %11 {
      %c0_10 = arith.constant 0 : index
      %c0_11 = arith.constant 0 : index
      %12 = vector.load %arg7[%c0_10, %c0_11] : memref<16x128xf32, #tpu.memory_space<vmem>>, vector<16x128xf32>
      %c0_12 = arith.constant 0 : index
      %c0_13 = arith.constant 0 : index
      %13 = vector.load %arg5[%c0_12, %c0_13] : memref<1x128xf32, #tpu.memory_space<vmem>>, vector<1x128xf32>
      %14 = vector.broadcast %13 : vector<1x128xf32> to vector<16x128xf32>
      %15 = arith.addf %12, %14 : vector<16x128xf32>
      %c0_14 = arith.constant 0 : index
      %c0_15 = arith.constant 0 : index
      %16 = vector.load %arg6[%c0_14, %c0_15] : memref<16x128xf32, #tpu.memory_space<vmem>>, vector<16x128xf32>
      tpu.vector_store %arg6[%c0_14, %c0_15], %15 {strides = array<i32>} : memref<16x128xf32, #tpu.memory_space<vmem>>, vector<16x128xf32>,
    } else {
    }
    return
  }
  func.func @transform_0(%arg0: i32, %arg1: i32, %arg2: i32) -> (i32, i32) {
    %c0_i32 = arith.constant 0 : i32
    return %arg0, %arg2 : i32, i32
  }
  func.func @transform_1(%arg0: i32, %arg1: i32, %arg2: i32) -> (i32, i32) {
    %c0_i32 = arith.constant 0 : i32
    return %arg2, %arg1 : i32, i32
  }
  func.func @transform_2(%arg0: i32, %arg1: i32, %arg2: i32) -> (i32, i32) {
    %c0_i32 = arith.constant 0 : i32
    %c0_i32_0 = arith.constant 0 : i32
    return %c0_i32, %arg1 : i32, i32
  }
  func.func @transform_3(%arg0: i32, %arg1: i32, %arg2: i32) -> (i32, i32) {
    %c0_i32 = arith.constant 0 : i32
    return %arg0, %arg1 : i32, i32
  }
}

module attributes {stable_mosaic.version = 11 : i64} {
  func.func @_attn_kernel(%arg0: i32, %arg1: memref<1x8x128xf32, #tpu.memory_space<vmem>>, %arg2: memref<1x8x128xf32, #tpu.memory_space<vmem>>, %arg3: memref<1x8x128xf32, #tpu.memory_space<vmem>>, %arg4: memref<1x8x128xf32, #tpu.memory_space<vmem>>) attributes {dimension_semantics = [#tpu.dimension_semantics<parallel>], iteration_bounds = array<i64: 4>, scalar_prefetch = 0 : i64, scratch_operands = 0 : i64, tpu.core_type = #tpu.core_type<tc>, window_params = [{transform_indices = @transform_0, window_bounds = array<i64: 1, 8, 128>}, {transform_indices = @transform_1, window_bounds = array<i64: 1, 8, 128>}, {transform_indices = @transform_2, window_bounds = array<i64: 1, 8, 128>}, {transform_indices = @transform_3, window_bounds = array<i64: 1, 8, 128>}]} {
    %c0 = arith.constant 0 : index
    %c0_0 = arith.constant 0 : index
    %c0_1 = arith.constant 0 : index
    %0 = vector.load %arg1[%c0, %c0_0, %c0_1] : memref<1x8x128xf32, #tpu.memory_space<vmem>>, vector<1x8x128xf32>
    %1 = vector.shape_cast %0 : vector<1x8x128xf32> to vector<8x128xf32>
    %c0_2 = arith.constant 0 : index
    %c0_3 = arith.constant 0 : index
    %c0_4 = arith.constant 0 : index
    %2 = vector.load %arg2[%c0_2, %c0_3, %c0_4] : memref<1x8x128xf32, #tpu.memory_space<vmem>>, vector<1x8x128xf32>
    %3 = vector.shape_cast %2 : vector<1x8x128xf32> to vector<8x128xf32>
    %c0_5 = arith.constant 0 : index
    %c0_6 = arith.constant 0 : index
    %c0_7 = arith.constant 0 : index
    %4 = vector.load %arg3[%c0_5, %c0_6, %c0_7] : memref<1x8x128xf32, #tpu.memory_space<vmem>>, vector<1x8x128xf32>
    %5 = vector.shape_cast %4 : vector<1x8x128xf32> to vector<8x128xf32>
    %6 = tpu.transpose %3, [1, 0] : vector<8x128xf32> -> vector<128x8xf32>
    %cst = arith.constant dense<0.000000e+00> : vector<8x8xf32>
    %7 = tpu.matmul %1, %6, %cst {dimension_numbers = #tpu.dot_dimension_numbers<[1], [0], [0], [1], [0, 0, 1, 1], [], []>} : vector<8x128xf32>, vector<128x8xf32>, vector<8x8xf32> -> vector<8x8xf32>
    %cst_8 = arith.constant 2.500000e-01 : f32
    %8 = vector.broadcast %cst_8 : f32 to vector<8x8xf32>
    %9 = arith.mulf %7, %8 : vector<8x8xf32>
    %cst_9 = arith.constant dense<0xFF800000> : vector<8xf32>
    %10 = vector.multi_reduction <maximumf>, %9, %cst_9 [1] : vector<8x8xf32> to vector<8xf32>
    %11 = vector.shape_cast %10 : vector<8xf32> to vector<8x1xf32>
    %12 = vector.broadcast %11 : vector<8x1xf32> to vector<8x8xf32>
    %13 = arith.subf %9, %12 : vector<8x8xf32>
    %14 = math.exp %13 : vector<8x8xf32>
    %cst_10 = arith.constant dense<0.000000e+00> : vector<8xf32>
    %15 = vector.multi_reduction <add>, %14, %cst_10 [1] : vector<8x8xf32> to vector<8xf32>
    %16 = vector.shape_cast %15 : vector<8xf32> to vector<8x1xf32>
    %17 = vector.broadcast %16 : vector<8x1xf32> to vector<8x8xf32>
    %18 = arith.divf %14, %17 : vector<8x8xf32>
    %cst_11 = arith.constant dense<0.000000e+00> : vector<8x128xf32>
    %19 = tpu.matmul %18, %5, %cst_11 {dimension_numbers = #tpu.dot_dimension_numbers<[1], [0], [0], [1], [0, 0, 1, 1], [], []>} : vector<8x8xf32>, vector<8x128xf32>, vector<8x128xf32> -> vector<8x128xf32>
    %c0_12 = arith.constant 0 : index
    %c0_13 = arith.constant 0 : index
    %c0_14 = arith.constant 0 : index
    %20 = vector.load %arg4[%c0_12, %c0_13, %c0_14] : memref<1x8x128xf32, #tpu.memory_space<vmem>>, vector<1x8x128xf32>
    %21 = vector.shape_cast %20 : vector<1x8x128xf32> to vector<8x128xf32>
    %22 = vector.shape_cast %19 : vector<8x128xf32> to vector<1x8x128xf32>
    tpu.vector_store %arg4[%c0_12, %c0_13, %c0_14], %22 {strides = array<i32>} : memref<1x8x128xf32, #tpu.memory_space<vmem>>, vector<1x8x128xf32>,
    return
  }
  func.func @transform_0(%arg0: i32) -> (i32, i32, i32) {
    %c0_i32 = arith.constant 0 : i32
    %c0_i32_0 = arith.constant 0 : i32
    %c0_i32_1 = arith.constant 0 : i32
    return %arg0, %c0_i32, %c0_i32_0 : i32, i32, i32
  }
  func.func @transform_1(%arg0: i32) -> (i32, i32, i32) {
    %c0_i32 = arith.constant 0 : i32
    %c0_i32_0 = arith.constant 0 : i32
    %c0_i32_1 = arith.constant 0 : i32
    return %arg0, %c0_i32, %c0_i32_0 : i32, i32, i32
  }
  func.func @transform_2(%arg0: i32) -> (i32, i32, i32) {
    %c0_i32 = arith.constant 0 : i32
    %c0_i32_0 = arith.constant 0 : i32
    %c0_i32_1 = arith.constant 0 : i32
    return %arg0, %c0_i32, %c0_i32_0 : i32, i32, i32
  }
  func.func @transform_3(%arg0: i32) -> (i32, i32, i32) {
    %c0_i32 = arith.constant 0 : i32
    %c0_i32_0 = arith.constant 0 : i32
    %c0_i32_1 = arith.constant 0 : i32
    return %arg0, %c0_i32, %c0_i32_0 : i32, i32, i32
  }
}

module attributes {stable_mosaic.version = 11 : i64} {
  func.func @_matmul_res_kernel(%arg0: i32, %arg1: i32, %arg2: i32, %arg3: memref<16x128xf32, #tpu.memory_space<vmem>>, %arg4: memref<128x128xf32, #tpu.memory_space<vmem>>, %arg5: memref<1x128xf32, #tpu.memory_space<vmem>>, %arg6: memref<16x128xf32, #tpu.memory_space<vmem>>, %arg7: memref<16x128xf32, #tpu.memory_space<vmem>>, %arg8: memref<16x128xf32, #tpu.memory_space<vmem>>) attributes {dimension_semantics = [#tpu.dimension_semantics<parallel>, #tpu.dimension_semantics<parallel>, #tpu.dimension_semantics<arbitrary>], iteration_bounds = array<i64: 1, 1, 1>, scalar_prefetch = 0 : i64, scratch_operands = 1 : i64, tpu.core_type = #tpu.core_type<tc>, window_params = [{transform_indices = @transform_0, window_bounds = array<i64: 16, 128>}, {transform_indices = @transform_1, window_bounds = array<i64: 128, 128>}, {transform_indices = @transform_2, window_bounds = array<i64: 1, 128>}, {transform_indices = @transform_3, window_bounds = array<i64: 16, 128>}, {transform_indices = @transform_4, window_bounds = array<i64: 16, 128>}]} {
    %c0_i32 = arith.constant 0 : i32
    %0 = arith.cmpi eq, %arg2, %c0_i32 : i32
    %1 = arith.extui %0 : i1 to i32
    %c0_i32_0 = arith.constant 0 : i32
    %2 = arith.cmpi ne, %1, %c0_i32_0 : i32
    scf.if %2 {
      %cst_10 = arith.constant 0.000000e+00 : f32
      %12 = vector.broadcast %cst_10 : f32 to vector<16x128xf32>
      %c0_11 = arith.constant 0 : index
      %c0_12 = arith.constant 0 : index
      %13 = vector.load %arg8[%c0_11, %c0_12] : memref<16x128xf32, #tpu.memory_space<vmem>>, vector<16x128xf32>
      tpu.vector_store %arg8[%c0_11, %c0_12], %12 {strides = array<i32>} : memref<16x128xf32, #tpu.memory_space<vmem>>, vector<16x128xf32>,
    } else {
    }
    %c0 = arith.constant 0 : index
    %c0_1 = arith.constant 0 : index
    %3 = vector.load %arg8[%c0, %c0_1] : memref<16x128xf32, #tpu.memory_space<vmem>>, vector<16x128xf32>
    %c0_2 = arith.constant 0 : index
    %c0_3 = arith.constant 0 : index
    %4 = vector.load %arg3[%c0_2, %c0_3] : memref<16x128xf32, #tpu.memory_space<vmem>>, vector<16x128xf32>
    %c0_4 = arith.constant 0 : index
    %c0_5 = arith.constant 0 : index
    %5 = vector.load %arg4[%c0_4, %c0_5] : memref<128x128xf32, #tpu.memory_space<vmem>>, vector<128x128xf32>
    %cst = arith.constant dense<0.000000e+00> : vector<16x128xf32>
    %6 = tpu.matmul %4, %5, %cst {dimension_numbers = #tpu.dot_dimension_numbers<[1], [0], [0], [1], [0, 0, 1, 1], [], []>} : vector<16x128xf32>, vector<128x128xf32>, vector<16x128xf32> -> vector<16x128xf32>
    %7 = arith.addf %3, %6 : vector<16x128xf32>
    %c0_6 = arith.constant 0 : index
    %c0_7 = arith.constant 0 : index
    %8 = vector.load %arg8[%c0_6, %c0_7] : memref<16x128xf32, #tpu.memory_space<vmem>>, vector<16x128xf32>
    tpu.vector_store %arg8[%c0_6, %c0_7], %7 {strides = array<i32>} : memref<16x128xf32, #tpu.memory_space<vmem>>, vector<16x128xf32>,
    %c0_i32_8 = arith.constant 0 : i32
    %9 = arith.cmpi eq, %arg2, %c0_i32_8 : i32
    %10 = arith.extui %9 : i1 to i32
    %c0_i32_9 = arith.constant 0 : i32
    %11 = arith.cmpi ne, %10, %c0_i32_9 : i32
    scf.if %11 {
      %c0_10 = arith.constant 0 : index
      %c0_11 = arith.constant 0 : index
      %12 = vector.load %arg8[%c0_10, %c0_11] : memref<16x128xf32, #tpu.memory_space<vmem>>, vector<16x128xf32>
      %c0_12 = arith.constant 0 : index
      %c0_13 = arith.constant 0 : index
      %13 = vector.load %arg5[%c0_12, %c0_13] : memref<1x128xf32, #tpu.memory_space<vmem>>, vector<1x128xf32>
      %14 = vector.broadcast %13 : vector<1x128xf32> to vector<16x128xf32>
      %15 = arith.addf %12, %14 : vector<16x128xf32>
      %c0_14 = arith.constant 0 : index
      %c0_15 = arith.constant 0 : index
      %16 = vector.load %arg6[%c0_14, %c0_15] : memref<16x128xf32, #tpu.memory_space<vmem>>, vector<16x128xf32>
      %17 = arith.addf %15, %16 : vector<16x128xf32>
      %c0_16 = arith.constant 0 : index
      %c0_17 = arith.constant 0 : index
      %18 = vector.load %arg7[%c0_16, %c0_17] : memref<16x128xf32, #tpu.memory_space<vmem>>, vector<16x128xf32>
      tpu.vector_store %arg7[%c0_16, %c0_17], %17 {strides = array<i32>} : memref<16x128xf32, #tpu.memory_space<vmem>>, vector<16x128xf32>,
    } else {
    }
    return
  }
  func.func @transform_0(%arg0: i32, %arg1: i32, %arg2: i32) -> (i32, i32) {
    %c0_i32 = arith.constant 0 : i32
    return %arg0, %arg2 : i32, i32
  }
  func.func @transform_1(%arg0: i32, %arg1: i32, %arg2: i32) -> (i32, i32) {
    %c0_i32 = arith.constant 0 : i32
    return %arg2, %arg1 : i32, i32
  }
  func.func @transform_2(%arg0: i32, %arg1: i32, %arg2: i32) -> (i32, i32) {
    %c0_i32 = arith.constant 0 : i32
    %c0_i32_0 = arith.constant 0 : i32
    return %c0_i32, %arg1 : i32, i32
  }
  func.func @transform_3(%arg0: i32, %arg1: i32, %arg2: i32) -> (i32, i32) {
    %c0_i32 = arith.constant 0 : i32
    return %arg0, %arg1 : i32, i32
  }
  func.func @transform_4(%arg0: i32, %arg1: i32, %arg2: i32) -> (i32, i32) {
    %c0_i32 = arith.constant 0 : i32
    return %arg0, %arg1 : i32, i32
  }
}

module attributes {stable_mosaic.version = 11 : i64} {
  func.func @_ffn_kernel(%arg0: i32, %arg1: i32, %arg2: memref<16x128xf32, #tpu.memory_space<vmem>>, %arg3: memref<128x128xf32, #tpu.memory_space<vmem>>, %arg4: memref<1x128xf32, #tpu.memory_space<vmem>>, %arg5: memref<128x128xf32, #tpu.memory_space<vmem>>, %arg6: memref<1x128xf32, #tpu.memory_space<vmem>>, %arg7: memref<16x128xf32, #tpu.memory_space<vmem>>, %arg8: memref<16x128xf32, #tpu.memory_space<vmem>>, %arg9: memref<16x128xf32, #tpu.memory_space<vmem>>) attributes {dimension_semantics = [#tpu.dimension_semantics<parallel>, #tpu.dimension_semantics<arbitrary>], iteration_bounds = array<i64: 1, 1>, scalar_prefetch = 0 : i64, scratch_operands = 1 : i64, tpu.core_type = #tpu.core_type<tc>, window_params = [{transform_indices = @transform_0, window_bounds = array<i64: 16, 128>}, {transform_indices = @transform_1, window_bounds = array<i64: 128, 128>}, {transform_indices = @transform_2, window_bounds = array<i64: 1, 128>}, {transform_indices = @transform_3, window_bounds = array<i64: 128, 128>}, {pipeline_mode = #tpu.pipeline_mode<synchronous>, transform_indices = @transform_4, window_bounds = array<i64: 1, 128>}, {transform_indices = @transform_5, window_bounds = array<i64: 16, 128>}, {transform_indices = @transform_6, window_bounds = array<i64: 16, 128>}]} {
    %c0_i32 = arith.constant 0 : i32
    %0 = arith.cmpi eq, %arg1, %c0_i32 : i32
    %1 = arith.extui %0 : i1 to i32
    %c0_i32_0 = arith.constant 0 : i32
    %2 = arith.cmpi ne, %1, %c0_i32_0 : i32
    scf.if %2 {
      %cst_18 = arith.constant 0.000000e+00 : f32
      %25 = vector.broadcast %cst_18 : f32 to vector<16x128xf32>
      %c0_19 = arith.constant 0 : index
      %c0_20 = arith.constant 0 : index
      %26 = vector.load %arg9[%c0_19, %c0_20] : memref<16x128xf32, #tpu.memory_space<vmem>>, vector<16x128xf32>
      tpu.vector_store %arg9[%c0_19, %c0_20], %25 {strides = array<i32>} : memref<16x128xf32, #tpu.memory_space<vmem>>, vector<16x128xf32>,
    } else {
    }
    %c0 = arith.constant 0 : index
    %c0_1 = arith.constant 0 : index
    %3 = vector.load %arg2[%c0, %c0_1] : memref<16x128xf32, #tpu.memory_space<vmem>>, vector<16x128xf32>
    %c0_2 = arith.constant 0 : index
    %c0_3 = arith.constant 0 : index
    %4 = vector.load %arg3[%c0_2, %c0_3] : memref<128x128xf32, #tpu.memory_space<vmem>>, vector<128x128xf32>
    %cst = arith.constant dense<0.000000e+00> : vector<16x128xf32>
    %5 = tpu.matmul %3, %4, %cst {dimension_numbers = #tpu.dot_dimension_numbers<[1], [0], [0], [1], [0, 0, 1, 1], [], []>} : vector<16x128xf32>, vector<128x128xf32>, vector<16x128xf32> -> vector<16x128xf32>
    %c0_4 = arith.constant 0 : index
    %c0_5 = arith.constant 0 : index
    %6 = vector.load %arg4[%c0_4, %c0_5] : memref<1x128xf32, #tpu.memory_space<vmem>>, vector<1x128xf32>
    %7 = vector.broadcast %6 : vector<1x128xf32> to vector<16x128xf32>
    %8 = arith.addf %5, %7 : vector<16x128xf32>
    %cst_6 = arith.constant 5.000000e-01 : f32
    %9 = vector.broadcast %cst_6 : f32 to vector<16x128xf32>
    %10 = arith.mulf %9, %8 : vector<16x128xf32>
    %cst_7 = arith.constant 0.707106769 : f32
    %11 = vector.broadcast %cst_7 : f32 to vector<16x128xf32>
    %12 = arith.mulf %8, %11 : vector<16x128xf32>
    %13 = math.erf %12 : vector<16x128xf32>
    %cst_8 = arith.constant 1.000000e+00 : f32
    %14 = vector.broadcast %cst_8 : f32 to vector<16x128xf32>
    %15 = arith.addf %14, %13 : vector<16x128xf32>
    %16 = arith.mulf %10, %15 : vector<16x128xf32>
    %c0_9 = arith.constant 0 : index
    %c0_10 = arith.constant 0 : index
    %17 = vector.load %arg9[%c0_9, %c0_10] : memref<16x128xf32, #tpu.memory_space<vmem>>, vector<16x128xf32>
    %c0_11 = arith.constant 0 : index
    %c0_12 = arith.constant 0 : index
    %18 = vector.load %arg5[%c0_11, %c0_12] : memref<128x128xf32, #tpu.memory_space<vmem>>, vector<128x128xf32>
    %cst_13 = arith.constant dense<0.000000e+00> : vector<16x128xf32>
    %19 = tpu.matmul %16, %18, %cst_13 {dimension_numbers = #tpu.dot_dimension_numbers<[1], [0], [0], [1], [0, 0, 1, 1], [], []>} : vector<16x128xf32>, vector<128x128xf32>, vector<16x128xf32> -> vector<16x128xf32>
    %20 = arith.addf %17, %19 : vector<16x128xf32>
    %c0_14 = arith.constant 0 : index
    %c0_15 = arith.constant 0 : index
    %21 = vector.load %arg9[%c0_14, %c0_15] : memref<16x128xf32, #tpu.memory_space<vmem>>, vector<16x128xf32>
    tpu.vector_store %arg9[%c0_14, %c0_15], %20 {strides = array<i32>} : memref<16x128xf32, #tpu.memory_space<vmem>>, vector<16x128xf32>,
    %c0_i32_16 = arith.constant 0 : i32
    %22 = arith.cmpi eq, %arg1, %c0_i32_16 : i32
    %23 = arith.extui %22 : i1 to i32
    %c0_i32_17 = arith.constant 0 : i32
    %24 = arith.cmpi ne, %23, %c0_i32_17 : i32
    scf.if %24 {
      %c0_18 = arith.constant 0 : index
      %c0_19 = arith.constant 0 : index
      %25 = vector.load %arg9[%c0_18, %c0_19] : memref<16x128xf32, #tpu.memory_space<vmem>>, vector<16x128xf32>
      %c0_20 = arith.constant 0 : index
      %c0_21 = arith.constant 0 : index
      %26 = vector.load %arg6[%c0_20, %c0_21] : memref<1x128xf32, #tpu.memory_space<vmem>>, vector<1x128xf32>
      %27 = vector.broadcast %26 : vector<1x128xf32> to vector<16x128xf32>
      %28 = arith.addf %25, %27 : vector<16x128xf32>
      %c0_22 = arith.constant 0 : index
      %c0_23 = arith.constant 0 : index
      %29 = vector.load %arg7[%c0_22, %c0_23] : memref<16x128xf32, #tpu.memory_space<vmem>>, vector<16x128xf32>
      %30 = arith.addf %28, %29 : vector<16x128xf32>
      %c0_24 = arith.constant 0 : index
      %c0_25 = arith.constant 0 : index
      %31 = vector.load %arg8[%c0_24, %c0_25] : memref<16x128xf32, #tpu.memory_space<vmem>>, vector<16x128xf32>
      tpu.vector_store %arg8[%c0_24, %c0_25], %30 {strides = array<i32>} : memref<16x128xf32, #tpu.memory_space<vmem>>, vector<16x128xf32>,
    } else {
    }
    return
  }
  func.func @transform_0(%arg0: i32, %arg1: i32) -> (i32, i32) {
    %c0_i32 = arith.constant 0 : i32
    %c0_i32_0 = arith.constant 0 : i32
    return %arg0, %c0_i32 : i32, i32
  }
  func.func @transform_1(%arg0: i32, %arg1: i32) -> (i32, i32) {
    %c0_i32 = arith.constant 0 : i32
    %c0_i32_0 = arith.constant 0 : i32
    return %c0_i32, %arg1 : i32, i32
  }
  func.func @transform_2(%arg0: i32, %arg1: i32) -> (i32, i32) {
    %c0_i32 = arith.constant 0 : i32
    %c0_i32_0 = arith.constant 0 : i32
    return %c0_i32, %arg1 : i32, i32
  }
  func.func @transform_3(%arg0: i32, %arg1: i32) -> (i32, i32) {
    %c0_i32 = arith.constant 0 : i32
    %c0_i32_0 = arith.constant 0 : i32
    return %arg1, %c0_i32 : i32, i32
  }
  func.func @transform_4(%arg0: i32, %arg1: i32) -> (i32, i32) {
    %c0_i32 = arith.constant 0 : i32
    %c0_i32_0 = arith.constant 0 : i32
    %c0_i32_1 = arith.constant 0 : i32
    return %c0_i32, %c0_i32_0 : i32, i32
  }
  func.func @transform_5(%arg0: i32, %arg1: i32) -> (i32, i32) {
    %c0_i32 = arith.constant 0 : i32
    %c0_i32_0 = arith.constant 0 : i32
    return %arg0, %c0_i32 : i32, i32
  }
  func.func @transform_6(%arg0: i32, %arg1: i32) -> (i32, i32) {
    %c0_i32 = arith.constant 0 : i32
    %c0_i32_0 = arith.constant 0 : i32
    return %arg0, %c0_i32 : i32, i32
  }
}

</mosaic_0001>

<bundles_post_ra>
// kernel: transformer_forward.13
= control target key start
LH: loop header
LB: loop body
LE: loop exit
PB: predicated region body
PF: predicated region fallthrough
CT: control target
= control target key end

     0   :  { %v16_v0 = vlaneseq  ;;  %s113_s0 = inlined_call_operand.vmem [shape: f32[16,128], index: 0, kind: input, shape index: {}]   ;;  %s114_s1 = inlined_call_operand.vmem [shape: f32[1,128], index: 1, kind: input, shape index: {}]   ;;  %s115_s2 = inlined_call_operand.vmem [shape: f32[1,128], index: 2, kind: input, shape index: {}]   ;;  %s116_s3 = inlined_call_operand.vmem [shape: f32[16,128], index: 3, kind: output, shape index: {}]  }
   0x1   :  { %v14_v1 = vld [vmem:[%s113_s0] sm:$0xff]  ;;  %v15_v3 = vld [vmem:[%s113_s0 + $0x8] sm:$0xff] }
   0x2   :  { %v17_v2 = vand.u32 127, %v16_v0  ;;  %v69_v23 = vld [vmem:[%s114_s1] ss:$0 sm:$0xff] }
   0x3   :  { %v70_v25 = vld [vmem:[%s115_s2] ss:$0 sm:$0xff] }
   0x4   :  { %vm18_vm0 = vcmp.lt.s32.totalorder %v17_v2, 32 }
   0x5   :  { %v19_v4 = vsel %vm18_vm0, %v14_v1, 0.0  ;;  %v20_v5 = vsel %vm18_vm0, %v15_v3, 0.0 }
   0x6   :  { %21 = vadd.xlane.f32.xlu0 %v19_v4 }
   0xa   :  { %23 = vadd.xlane.f32.xlu0 %v20_v5 }
  0x8f   :  { %v22_v6 = vpop.xlane.xlu0 %21 }
  0x90   :  { %v25_v7 = vmul.f32 0.03125, %v22_v6 }
  0x92   :  { %v27_v8 = vsub.f32 %v19_v4, %v25_v7 }
  0x93   :  { %v24_v9 = vpop.xlane.xlu0 %23 }
  0x94   :  { %v26_v10 = vmul.f32 0.03125, %v24_v9  ;;  %v29_v11 = vsel %vm18_vm0, %v27_v8, 0.0 }
  0x95   :  { %v31_v12 = vmul.f32 %v29_v11, %v29_v11 }
  0x96   :  { %v28_v13 = vsub.f32 %v20_v5, %v26_v10 }
  0x97   :  { %33 = vadd.xlane.f32.xlu1 %v31_v12 }
  0x98   :  { %v30_v14 = vsel %vm18_vm0, %v28_v13, 0.0 }
  0x99   :  { %v32_v15 = vmul.f32 %v30_v14, %v30_v14 }
  0x9b   :  { %35 = vadd.xlane.f32.xlu1 %v32_v15 }
 0x120   :  { %v34_v16 = vpop.xlane.xlu1 %33 }
 0x121   :  { %v37_v17 = vmul.f32 0.03125, %v34_v16 }
 0x123   :  { %v39_v18 = vadd.f32 1e-05, %v37_v17 }
 0x124   :  { %v36_v19 = vpop.xlane.xlu1 %35 }
 0x125   :  { %71 = vrsqrt.f32 %v39_v18  ;;  %v38_v20 = vmul.f32 0.03125, %v36_v19 }
 0x127   :  { %v40_v21 = vadd.f32 1e-05, %v38_v20 }
 0x129   :  { %73 = vrsqrt.f32 %v40_v21 }
 0x132   :  { %v72_v22 = vpop.eup %71 }
 0x133   :  { %v43_v24 = vmul.f32 %v72_v22, %v29_v11 }
 0x135   :  { %v52_v26 = vmul.f32 %v69_v23, %v43_v24 }
 0x136   :  { %v74_v27 = vpop.eup %73 }
 0x137   :  { %v61_v28 = vadd.f32 %v70_v25, %v52_v26  ;;  %v44_v29 = vmul.f32 %v74_v27, %v30_v14 }
 0x139   :  { %63 = vst [vmem:[%s116_s3] sm:$0xff] %v61_v28  ;;  %v53_v30 = vmul.f32 %v69_v23, %v44_v29 }
 0x13b   :  { %v62_v31 = vadd.f32 %v70_v25, %v53_v30 }
 0x13d   :  { %64 = vst [vmem:[%s116_s3 + $0x8] sm:$0xff] %v62_v31 }

// kernel: transformer_forward.14
= control target key start
LH: loop header
LB: loop body
LE: loop exit
PB: predicated region body
PF: predicated region fallthrough
CT: control target
= control target key end

     0   :  { %s276_s1 = inlined_call_operand.vmem [shape: f32[128,128], index: 1, kind: input, shape index: {}]   ;;  %s277_s0 = inlined_call_operand.vmem [shape: f32[16,128], index: 0, kind: input, shape index: {}]   ;;  %s278_s2 = inlined_call_operand.vmem [shape: f32[1,128], index: 2, kind: input, shape index: {}]   ;;  %s279_s3 = inlined_call_operand.vmem [shape: f32[16,128], index: 3, kind: output, shape index: {}]  }
   0x1   :  { %v39_v0 = vld [vmem:[%s276_s1 + $0x78] sm:$0xff]  ;;  %v38_v1 = vld [vmem:[%s276_s1 + $0x70] sm:$0xff]  ;;  %v37_v2 = vld [vmem:[%s276_s1 + $0x68] sm:$0xff] }
   0x2   :  { %158 = vmatprep.subr.mxu0 %v39_v0  ;;  %v36_v3 = vld [vmem:[%s276_s1 + $0x60] sm:$0xff]  ;;  %v35_v5 = vld [vmem:[%s276_s1 + $0x58] sm:$0xff]  ;;  %v34_v6 = vld [vmem:[%s276_s1 + $0x50] sm:$0xff] }
   0x3   :  { %159 = vmatpush3.msra.mxu0 %v39_v0  ;;  %v22_v4 = vld [vmem:[%s277_s0] sm:$0xff]  ;;  %v33_v7 = vld [vmem:[%s276_s1 + $0x48] sm:$0xff]  ;;  %v31_v9 = vld [vmem:[%s276_s1 + $0x38] sm:$0xff] }
   0x4   :  { %160 = vmatprep.subr.mxu0 %v38_v1  ;;  %190 = vmatprep.mubr.f32.mxu0 %v22_v4  ;;  %v32_v8 = vld [vmem:[%s276_s1 + $0x40] sm:$0xff]  ;;  %v30_v10 = vld [vmem:[%s276_s1 + $0x30] sm:$0xff]  ;;  %v29_v11 = vld [vmem:[%s276_s1 + $0x28] sm:$0xff] }
   0x5   :  { %161 = vmatpush3.msra.mxu0 %v38_v1  ;;  %v28_v12 = vld [vmem:[%s276_s1 + $0x20] sm:$0xff]  ;;  %v27_v13 = vld [vmem:[%s276_s1 + $0x18] sm:$0xff]  ;;  %v26_v14 = vld [vmem:[%s276_s1 + $0x10] sm:$0xff] }
   0x6   :  { %162 = vmatprep.subr.mxu0 %v37_v2  ;;  %v25_v15 = vld [vmem:[%s276_s1 + $0x8] sm:$0xff]  ;;  %v24_v16 = vld [vmem:[%s276_s1] sm:$0xff] }
   0x7   :  { %163 = vmatpush3.msra.mxu0 %v37_v2  ;;  %v23_v17 = vld [vmem:[%s277_s0 + $0x8] sm:$0xff]  ;;  %v139_v18 = vld [vmem:[%s278_s2] ss:$0 sm:$0xff] }
   0x8   :  { %164 = vmatprep.subr.mxu0 %v36_v3 }
   0x9   :  { %165 = vmatpush3.msra.mxu0 %v36_v3 }
   0xa   :  { %166 = vmatprep.subr.mxu0 %v35_v5 }
   0xb   :  { %167 = vmatpush3.msra.mxu0 %v35_v5 }
   0xc   :  { %168 = vmatprep.subr.mxu0 %v34_v6 }
   0xd   :  { %169 = vmatpush3.msra.mxu0 %v34_v6 }
   0xe   :  { %170 = vmatprep.subr.mxu0 %v33_v7 }
   0xf   :  { %171 = vmatpush3.msra.mxu0 %v33_v7 }
  0x10   :  { %172 = vmatprep.subr.mxu0 %v32_v8 }
  0x11   :  { %173 = vmatpush3.msra.mxu0 %v32_v8 }
  0x12   :  { %174 = vmatprep.subr.mxu0 %v31_v9 }
  0x13   :  { %175 = vmatpush3.msra.mxu0 %v31_v9 }
  0x14   :  { %176 = vmatprep.subr.mxu0 %v30_v10 }
  0x15   :  { %177 = vmatpush3.msra.mxu0 %v30_v10 }
  0x16   :  { %178 = vmatprep.subr.mxu0 %v29_v11 }
  0x17   :  { %179 = vmatpush3.msra.mxu0 %v29_v11 }
  0x18   :  { %180 = vmatprep.subr.mxu0 %v28_v12 }
  0x19   :  { %181 = vmatpush3.msra.mxu0 %v28_v12 }
  0x1a   :  { %182 = vmatprep.subr.mxu0 %v27_v13 }
  0x1b   :  { %183 = vmatpush3.msra.mxu0 %v27_v13 }
  0x1c   :  { %184 = vmatprep.subr.mxu0 %v26_v14 }
  0x1d   :  { %185 = vmatpush3.msra.mxu0 %v26_v14 }
  0x1e   :  { %186 = vmatprep.subr.mxu0 %v25_v15 }
  0x1f   :  { %187 = vmatpush3.msra.mxu0 %v25_v15 }
  0x20   :  { %188 = vmatprep.subr.mxu0 %v24_v16 }
  0x21   :  { %189 = vmatpush3.msra.mxu0 %v24_v16 }
  0x22   :  { %191 = vmatmul.mubr.f32.vlgmr.msra.gmra.mxu0 %v23_v17 }
  0xe2   :  { %v192_v19 = vpop.f32.mrf.mxu0 }
  0xe3   :  { %v132_v20 = vadd.f32 %v192_v19, %v139_v18 }
  0xe4   :  { %v106_v21 = vpop.f32.mrf.mxu0 }
  0xe5   :  { %134 = vst [vmem:[%s279_s3 + $0x8] sm:$0xff] %v132_v20  ;;  %v131_v22 = vadd.f32 %v139_v18, %v106_v21 }
  0xe7   :  { %133 = vst [vmem:[%s279_s3] sm:$0xff] %v131_v22 }

// kernel: transformer_forward.15
= control target key start
LH: loop header
LB: loop body
LE: loop exit
PB: predicated region body
PF: predicated region fallthrough
CT: control target
= control target key end

     0   :  { %s507_s12 = smov 0   ;;  %s539_s0 = inlined_call_operand.vmem [shape: f32[4,8,128], index: 0, kind: input, shape index: {}]   ;;  %s540_s1 = inlined_call_operand.vmem [shape: f32[4,8,128], index: 1, kind: input, shape index: {}]   ;;  %s541_s2 = inlined_call_operand.vmem [shape: f32[4,8,128], index: 2, kind: input, shape index: {}]   ;;  %s542_s3 = inlined_call_operand.vmem [shape: f32[4,8,128], index: 3, kind: output, shape index: {}]  }
   0x1 LB: > { %s437_s13 = sadd.s32 4294967295, %s483_s12   ;;  %p441_p0 = scmp.ge.s32.totalorder %s483_s12, 1  ;;  %s483_s12 = sphi %s507_s12, %s13_s12  }
   0x2   : > { %p154_p1 = scmp.lt.s32.totalorder %s483_s12, 5 }
   0x4   : > { %p155_p2 = pnand %p441_p0, %p154_p1 }
   0x5   : > { %p184_p3 = scmp.lt.s32.totalorder (!%p155_p2), %s437_s13, 3 }
   0x6   : > { %158 = sbr.rel (%p155_p2) target bundleno = 720 (0x2d0), region = 32 }
   0xb   : > { %v485_v0 = vmov 0.0   ;;  %vm486_vm0 = vmmov 0   ;;  %s544_s13 = smov (!%p184_p3, %s437_s13), 3  ;;  %vm274_vm1 = vcmask 64512  }
   0xc   : > { %453 = vmatprep.subr.mxu0 %v485_v0  ;;  %455 = vmatprep.mubr.msk.f32.mxu0 %vm486_vm0, %v485_v0  ;;  %s515_s14 = sshll.u32 %s544_s13, 3 }
   0xd   : > { %458 = vmatprep.subr.mxu1 %v485_v0  ;;  %460 = vmatprep.mubr.msk.f32.mxu1 %vm486_vm0, %v485_v0  ;;  %s191_s17 = scalar_lea.vmem %s540_s1, %s515_s14  ;;  %s187_s20 = scalar_lea.vmem %s539_s0, %s515_s14 }
   0xe   : > { %v201_v1 = vld [vmem:[%s191_s17] sm:$0xff]  ;;  %s195_s23 = scalar_lea.vmem %s541_s2, %s515_s14  ;;  %s199_s26 = scalar_lea.vmem %s542_s3, %s515_s14 }
   0xf   : > { %454 = vmatpush3.xpose.msra.mxu0 %v201_v1  ;;  %v200_v2 = vld [vmem:[%s187_s20] sm:$0xff] }
  0x10   : > { %v202_v12 = vld [vmem:[%s195_s23] sm:$0xff] }
  0x11   : > { %459 = vmatpush3.msra.mxu1 %v202_v12 }
  0x12   : > { %456 = vmatmul.mubr.f32.vlgmr.msra.gmra.mxu0 %v200_v2 }
  0xd2   : > { %v269_v3 = vpop.f32.mrf.mxu0 }
  0xd3   : > { %v273_v4 = vmul.f32 0.25, %v269_v3 }
  0xd4   : > { %v457_v5 = vpop.f32.mrf.mxu0 }
  0xd5   : > { %v275_v6 = vsel %vm274_vm1, %v273_v4, -inf }
  0xd6   : > { %276 = vmax.xlane.f32.xlu0 %v275_v6 }
 0x15f   : > { %v277_v7 = vpop.xlane.xlu0 %276 }
 0x160   : > { %v278_v8 = vsub.f32 %v273_v4, %v277_v7 }
 0x162   : > { %v279_v9 = vmul.f32 1.442695, %v278_v8 }
 0x164   : > { %473 = vpow2.f32 %v279_v9 }
 0x171   : > { %v474_v10 = vpop.eup %473 }
 0x172   : > { %v281_v11 = vsel %vm274_vm1, %v474_v10, 0.0 }
 0x173   : > { %282 = vadd.xlane.f32.xlu0 %v281_v11 }
 0x1fc   : > { %v283_v13 = vpop.xlane.xlu0 %282 }
 0x1fd   : > { %475 = vrcp.f32 %v283_v13 }
 0x20a   : > { %v476_v14 = vpop.eup %475 }
 0x20b   : > { %v285_v15 = vmul.f32 %v476_v14, %v474_v10 }
 0x20d   : > { %461 = vmatmul.mubr.msk.f32.vlgmr.msra.gmra.mxu1 %vm274_vm1, %v285_v15 }
 0x2cd   : > { %v355_v16 = vpop.f32.mrf.mxu1 }
 0x2ce   : > { %359 = vst [vmem:[%s199_s26] sm:$0xff] %v355_v16 }
 0x2cf   : > { %v462_v17 = vpop.f32.mrf.mxu1 }
 0x2d0 PF: > { %s13_s12 = sadd.s32 1, %s483_s12  }
 0x2d1   : > { %p10_p4 = scmp.ge.s32.totalorder %s13_s12, 6  }
 0x2d3   :  { %12 = sbr.rel (!%p10_p4) target bundleno = 1 (0x1), region = 68 }

// kernel: transformer_forward.16
= control target key start
LH: loop header
LB: loop body
LE: loop exit
PB: predicated region body
PF: predicated region fallthrough
CT: control target
= control target key end

     0   :  { %s294_s1 = inlined_call_operand.vmem [shape: f32[128,128], index: 1, kind: input, shape index: {}]   ;;  %s295_s0 = inlined_call_operand.vmem [shape: f32[16,128], index: 0, kind: input, shape index: {}]   ;;  %s296_s2 = inlined_call_operand.vmem [shape: f32[1,128], index: 2, kind: input, shape index: {}]   ;;  %s297_s3 = inlined_call_operand.vmem [shape: f32[16,128], index: 3, kind: input, shape index: {}]   ;;  %s298_s4 = inlined_call_operand.vmem [shape: f32[16,128], index: 4, kind: output, shape index: {}]  }
   0x1   :  { %v42_v0 = vld [vmem:[%s294_s1 + $0x78] sm:$0xff]  ;;  %v41_v1 = vld [vmem:[%s294_s1 + $0x70] sm:$0xff]  ;;  %v40_v2 = vld [vmem:[%s294_s1 + $0x68] sm:$0xff] }
   0x2   :  { %165 = vmatprep.subr.mxu0 %v42_v0  ;;  %v39_v3 = vld [vmem:[%s294_s1 + $0x60] sm:$0xff]  ;;  %v38_v5 = vld [vmem:[%s294_s1 + $0x58] sm:$0xff]  ;;  %v37_v6 = vld [vmem:[%s294_s1 + $0x50] sm:$0xff] }
   0x3   :  { %166 = vmatpush3.msra.mxu0 %v42_v0  ;;  %v25_v4 = vld [vmem:[%s295_s0] sm:$0xff]  ;;  %v36_v7 = vld [vmem:[%s294_s1 + $0x48] sm:$0xff]  ;;  %v34_v9 = vld [vmem:[%s294_s1 + $0x38] sm:$0xff] }
   0x4   :  { %167 = vmatprep.subr.mxu0 %v41_v1  ;;  %197 = vmatprep.mubr.f32.mxu0 %v25_v4  ;;  %v35_v8 = vld [vmem:[%s294_s1 + $0x40] sm:$0xff]  ;;  %v33_v10 = vld [vmem:[%s294_s1 + $0x30] sm:$0xff]  ;;  %v32_v11 = vld [vmem:[%s294_s1 + $0x28] sm:$0xff] }
   0x5   :  { %168 = vmatpush3.msra.mxu0 %v41_v1  ;;  %v31_v12 = vld [vmem:[%s294_s1 + $0x20] sm:$0xff]  ;;  %v30_v13 = vld [vmem:[%s294_s1 + $0x18] sm:$0xff]  ;;  %v29_v14 = vld [vmem:[%s294_s1 + $0x10] sm:$0xff] }
   0x6   :  { %169 = vmatprep.subr.mxu0 %v40_v2  ;;  %v28_v15 = vld [vmem:[%s294_s1 + $0x8] sm:$0xff]  ;;  %v27_v16 = vld [vmem:[%s294_s1] sm:$0xff] }
   0x7   :  { %170 = vmatpush3.msra.mxu0 %v40_v2  ;;  %v26_v17 = vld [vmem:[%s295_s0 + $0x8] sm:$0xff]  ;;  %v146_v18 = vld [vmem:[%s296_s2] ss:$0 sm:$0xff] }
   0x8   :  { %171 = vmatprep.subr.mxu0 %v39_v3  ;;  %v137_v20 = vld [vmem:[%s297_s3 + $0x8] sm:$0xff]  ;;  %v136_v23 = vld [vmem:[%s297_s3] sm:$0xff] }
   0x9   :  { %172 = vmatpush3.msra.mxu0 %v39_v3 }
   0xa   :  { %173 = vmatprep.subr.mxu0 %v38_v5 }
   0xb   :  { %174 = vmatpush3.msra.mxu0 %v38_v5 }
   0xc   :  { %175 = vmatprep.subr.mxu0 %v37_v6 }
   0xd   :  { %176 = vmatpush3.msra.mxu0 %v37_v6 }
   0xe   :  { %177 = vmatprep.subr.mxu0 %v36_v7 }
   0xf   :  { %178 = vmatpush3.msra.mxu0 %v36_v7 }
  0x10   :  { %179 = vmatprep.subr.mxu0 %v35_v8 }
  0x11   :  { %180 = vmatpush3.msra.mxu0 %v35_v8 }
  0x12   :  { %181 = vmatprep.subr.mxu0 %v34_v9 }
  0x13   :  { %182 = vmatpush3.msra.mxu0 %v34_v9 }
  0x14   :  { %183 = vmatprep.subr.mxu0 %v33_v10 }
  0x15   :  { %184 = vmatpush3.msra.mxu0 %v33_v10 }
  0x16   :  { %185 = vmatprep.subr.mxu0 %v32_v11 }
  0x17   :  { %186 = vmatpush3.msra.mxu0 %v32_v11 }
  0x18   :  { %187 = vmatprep.subr.mxu0 %v31_v12 }
  0x19   :  { %188 = vmatpush3.msra.mxu0 %v31_v12 }
  0x1a   :  { %189 = vmatprep.subr.mxu0 %v30_v13 }
  0x1b   :  { %190 = vmatpush3.msra.mxu0 %v30_v13 }
  0x1c   :  { %191 = vmatprep.subr.mxu0 %v29_v14 }
  0x1d   :  { %192 = vmatpush3.msra.mxu0 %v29_v14 }
  0x1e   :  { %193 = vmatprep.subr.mxu0 %v28_v15 }
  0x1f   :  { %194 = vmatpush3.msra.mxu0 %v28_v15 }
  0x20   :  { %195 = vmatprep.subr.mxu0 %v27_v16 }
  0x21   :  { %196 = vmatpush3.msra.mxu0 %v27_v16 }
  0x22   :  { %198 = vmatmul.mubr.f32.vlgmr.msra.gmra.mxu0 %v26_v17 }
  0xe2   :  { %v199_v19 = vpop.f32.mrf.mxu0 }
  0xe3   :  { %v135_v21 = vadd.f32 %v199_v19, %v146_v18 }
  0xe4   :  { %v109_v22 = vpop.f32.mrf.mxu0 }
  0xe5   :  { %v139_v24 = vadd.f32 %v137_v20, %v135_v21  ;;  %v134_v25 = vadd.f32 %v146_v18, %v109_v22 }
  0xe7   :  { %141 = vst [vmem:[%s298_s4 + $0x8] sm:$0xff] %v139_v24  ;;  %v138_v26 = vadd.f32 %v136_v23, %v134_v25 }
  0xe9   :  { %140 = vst [vmem:[%s298_s4] sm:$0xff] %v138_v26 }

// kernel: transformer_forward.18
= control target key start
LH: loop header
LB: loop body
LE: loop exit
PB: predicated region body
PF: predicated region fallthrough
CT: control target
= control target key end

     0   :  { %s527_s1 = inlined_call_operand.vmem [shape: f32[128,128], index: 1, kind: input, shape index: {}]   ;;  %s528_s0 = inlined_call_operand.vmem [shape: f32[16,128], index: 0, kind: input, shape index: {}]   ;;  %s529_s3 = inlined_call_operand.vmem [shape: f32[128,128], index: 3, kind: input, shape index: {}]   ;;  %s530_s2 = inlined_call_operand.vmem [shape: f32[1,128], index: 2, kind: input, shape index: {}]   ;;  %s531_s4 = inlined_call_operand.vmem [shape: f32[1,128], index: 4, kind: input, shape index: {}]   ;;  %s532_s5 = inlined_call_operand.vmem [shape: f32[16,128], index: 5, kind: input, shape index: {}]   ;;  %s533_s6 = inlined_call_operand.vmem [shape: f32[16,128], index: 6, kind: output, shape index: {}]  }
   0x1   :  { %v46_v0 = vld [vmem:[%s527_s1 + $0x78] sm:$0xff]  ;;  %v45_v1 = vld [vmem:[%s527_s1 + $0x70] sm:$0xff]  ;;  %v44_v2 = vld [vmem:[%s527_s1 + $0x68] sm:$0xff] }
   0x2   :  { %298 = vmatprep.subr.mxu0 %v46_v0  ;;  %v43_v3 = vld [vmem:[%s527_s1 + $0x60] sm:$0xff]  ;;  %v42_v5 = vld [vmem:[%s527_s1 + $0x58] sm:$0xff]  ;;  %v155_v7 = vld [vmem:[%s529_s3 + $0x70] sm:$0xff] }
   0x3   :  { %299 = vmatpush3.msra.mxu0 %v46_v0  ;;  %v29_v4 = vld [vmem:[%s528_s0] sm:$0xff]  ;;  %v156_v6 = vld [vmem:[%s529_s3 + $0x78] sm:$0xff]  ;;  %v41_v8 = vld [vmem:[%s527_s1 + $0x50] sm:$0xff] }
   0x4   :  { %300 = vmatprep.subr.mxu0 %v45_v1  ;;  %330 = vmatprep.mubr.f32.mxu0 %v29_v4  ;;  %v154_v9 = vld [vmem:[%s529_s3 + $0x68] sm:$0xff]  ;;  %v39_v11 = vld [vmem:[%s527_s1 + $0x40] sm:$0xff]  ;;  %v38_v12 = vld [vmem:[%s527_s1 + $0x38] sm:$0xff] }
   0x5   :  { %301 = vmatpush3.msra.mxu0 %v45_v1  ;;  %333 = vmatprep.subr.mxu1 %v156_v6  ;;  %v40_v10 = vld [vmem:[%s527_s1 + $0x48] sm:$0xff]  ;;  %v37_v13 = vld [vmem:[%s527_s1 + $0x30] sm:$0xff]  ;;  %v35_v15 = vld [vmem:[%s527_s1 + $0x20] sm:$0xff] }
   0x6   :  { %302 = vmatprep.subr.mxu0 %v44_v2  ;;  %334 = vmatpush3.msra.mxu1 %v156_v6  ;;  %v36_v14 = vld [vmem:[%s527_s1 + $0x28] sm:$0xff]  ;;  %v34_v16 = vld [vmem:[%s527_s1 + $0x18] sm:$0xff]  ;;  %v33_v17 = vld [vmem:[%s527_s1 + $0x10] sm:$0xff] }
   0x7   :  { %303 = vmatpush3.msra.mxu0 %v44_v2  ;;  %335 = vmatprep.subr.mxu1 %v155_v7  ;;  %v32_v18 = vld [vmem:[%s527_s1 + $0x8] sm:$0xff]  ;;  %v31_v19 = vld [vmem:[%s527_s1] sm:$0xff]  ;;  %v152_v22 = vld [vmem:[%s529_s3 + $0x58] sm:$0xff] }
   0x8   :  { %304 = vmatprep.subr.mxu0 %v43_v3  ;;  %336 = vmatpush3.msra.mxu1 %v155_v7  ;;  %v30_v20 = vld [vmem:[%s528_s0 + $0x8] sm:$0xff]  ;;  %v153_v21 = vld [vmem:[%s529_s3 + $0x60] sm:$0xff]  ;;  %v151_v23 = vld [vmem:[%s529_s3 + $0x50] sm:$0xff] }
   0x9   :  { %305 = vmatpush3.msra.mxu0 %v43_v3  ;;  %337 = vmatprep.subr.mxu1 %v154_v9  ;;  %v150_v24 = vld [vmem:[%s529_s3 + $0x48] sm:$0xff]  ;;  %v149_v25 = vld [vmem:[%s529_s3 + $0x40] sm:$0xff]  ;;  %v148_v26 = vld [vmem:[%s529_s3 + $0x38] sm:$0xff] }
   0xa   :  { %306 = vmatprep.subr.mxu0 %v42_v5  ;;  %338 = vmatpush3.msra.mxu1 %v154_v9  ;;  %v147_v27 = vld [vmem:[%s529_s3 + $0x30] sm:$0xff]  ;;  %v146_v28 = vld [vmem:[%s529_s3 + $0x28] sm:$0xff]  ;;  %v145_v29 = vld [vmem:[%s529_s3 + $0x20] sm:$0xff] }
   0xb   :  { %307 = vmatpush3.msra.mxu0 %v42_v5  ;;  %339 = vmatprep.subr.mxu1 %v153_v21  ;;  %v144_v30 = vld [vmem:[%s529_s3 + $0x18] sm:$0xff]  ;;  %v143_v31 = vld [vmem:[%s529_s3 + $0x10] sm:$0xff]  ;;  %v142_v32 = vld [vmem:[%s529_s3 + $0x8] sm:$0xff] }
   0xc   :  { %308 = vmatprep.subr.mxu0 %v41_v8  ;;  %340 = vmatpush3.msra.mxu1 %v153_v21  ;;  %v141_v33 = vld [vmem:[%s529_s3] sm:$0xff]  ;;  %v251_v51 = vld [vmem:[%s532_s5 + $0x8] sm:$0xff] }
   0xd   :  { %309 = vmatpush3.msra.mxu0 %v41_v8  ;;  %341 = vmatprep.subr.mxu1 %v152_v22  ;;  %v260_v34 = vld [vmem:[%s530_s2] ss:$0 sm:$0xff] }
   0xe   :  { %310 = vmatprep.subr.mxu0 %v40_v10  ;;  %342 = vmatpush3.msra.mxu1 %v152_v22  ;;  %v261_v49 = vld [vmem:[%s531_s4] ss:$0 sm:$0xff] }
   0xf   :  { %311 = vmatpush3.msra.mxu0 %v40_v10  ;;  %343 = vmatprep.subr.mxu1 %v151_v23  ;;  %v250_v54 = vld [vmem:[%s532_s5] sm:$0xff] }
  0x10   :  { %312 = vmatprep.subr.mxu0 %v39_v11  ;;  %344 = vmatpush3.msra.mxu1 %v151_v23 }
  0x11   :  { %313 = vmatpush3.msra.mxu0 %v39_v11  ;;  %345 = vmatprep.subr.mxu1 %v150_v24 }
  0x12   :  { %314 = vmatprep.subr.mxu0 %v38_v12  ;;  %346 = vmatpush3.msra.mxu1 %v150_v24 }
  0x13   :  { %315 = vmatpush3.msra.mxu0 %v38_v12  ;;  %347 = vmatprep.subr.mxu1 %v149_v25 }
  0x14   :  { %316 = vmatprep.subr.mxu0 %v37_v13  ;;  %348 = vmatpush3.msra.mxu1 %v149_v25 }
  0x15   :  { %317 = vmatpush3.msra.mxu0 %v37_v13  ;;  %349 = vmatprep.subr.mxu1 %v148_v26 }
  0x16   :  { %318 = vmatprep.subr.mxu0 %v36_v14  ;;  %350 = vmatpush3.msra.mxu1 %v148_v26 }
  0x17   :  { %319 = vmatpush3.msra.mxu0 %v36_v14  ;;  %351 = vmatprep.subr.mxu1 %v147_v27 }
  0x18   :  { %320 = vmatprep.subr.mxu0 %v35_v15  ;;  %352 = vmatpush3.msra.mxu1 %v147_v27 }
  0x19   :  { %321 = vmatpush3.msra.mxu0 %v35_v15  ;;  %353 = vmatprep.subr.mxu1 %v146_v28 }
  0x1a   :  { %322 = vmatprep.subr.mxu0 %v34_v16  ;;  %354 = vmatpush3.msra.mxu1 %v146_v28 }
  0x1b   :  { %323 = vmatpush3.msra.mxu0 %v34_v16  ;;  %355 = vmatprep.subr.mxu1 %v145_v29 }
  0x1c   :  { %324 = vmatprep.subr.mxu0 %v33_v17  ;;  %356 = vmatpush3.msra.mxu1 %v145_v29 }
  0x1d   :  { %325 = vmatpush3.msra.mxu0 %v33_v17  ;;  %357 = vmatprep.subr.mxu1 %v144_v30 }
  0x1e   :  { %326 = vmatprep.subr.mxu0 %v32_v18  ;;  %358 = vmatpush3.msra.mxu1 %v144_v30 }
  0x1f   :  { %327 = vmatpush3.msra.mxu0 %v32_v18  ;;  %359 = vmatprep.subr.mxu1 %v143_v31 }
  0x20   :  { %328 = vmatprep.subr.mxu0 %v31_v19  ;;  %360 = vmatpush3.msra.mxu1 %v143_v31 }
  0x21   :  { %329 = vmatpush3.msra.mxu0 %v31_v19  ;;  %361 = vmatprep.subr.mxu1 %v142_v32 }
  0x22   :  { %331 = vmatmul.mubr.f32.vlgmr.msra.gmra.mxu0 %v30_v20  ;;  %362 = vmatpush3.msra.mxu1 %v142_v32 }
  0x23   :  { %363 = vmatprep.subr.mxu1 %v141_v33 }
  0x24   :  { %364 = vmatpush3.msra.mxu1 %v141_v33 }
  0xe2   :  { %v332_v35 = vpop.f32.mrf.mxu0 }
  0xe3   :  { %v126_v36 = vadd.f32 %v332_v35, %v260_v34 }
  0xe4   :  { %v120_v37 = vpop.f32.mrf.mxu0 }
  0xe5   :  { %v132_v38 = vmul.f32 0.70710677, %v126_v36  ;;  %v121_v39 = vadd.f32 %v260_v34, %v120_v37  ;;  %v130_v46 = vmul.f32 0.5, %v126_v36 }
  0xe7   :  { %368 = verf.f32 %v132_v38  ;;  %v131_v40 = vmul.f32 0.70710677, %v121_v39  ;;  %v129_v44 = vmul.f32 0.5, %v121_v39 }
  0xe9   :  { %370 = verf.f32 %v131_v40 }
  0xf4   :  { %v369_v41 = vpop.eup %368 }
  0xf5   :  { %v136_v43 = vadd.f32 1.0, %v369_v41 }
  0xf6   :  { %v371_v42 = vpop.eup %370 }
  0xf7   :  { %v135_v45 = vadd.f32 1.0, %v371_v42  ;;  %v138_v48 = vmul.f32 %v136_v43, %v130_v46 }
  0xf9   :  { %v137_v47 = vmul.f32 %v135_v45, %v129_v44 }
  0xfb   :  { %365 = vmatprep.mubr.f32.mxu1 %v137_v47 }
  0xfc   :  { %366 = vmatmul.mubr.f32.vlgmr.msra.gmra.mxu1 %v138_v48 }
 0x1bc   :  { %v367_v50 = vpop.f32.mrf.mxu1 }
 0x1bd   :  { %v249_v52 = vadd.f32 %v367_v50, %v261_v49 }
 0x1be   :  { %v223_v53 = vpop.f32.mrf.mxu1 }
 0x1bf   :  { %v253_v55 = vadd.f32 %v251_v51, %v249_v52  ;;  %v248_v56 = vadd.f32 %v261_v49, %v223_v53 }
 0x1c1   :  { %255 = vst [vmem:[%s533_s6 + $0x8] sm:$0xff] %v253_v55  ;;  %v252_v57 = vadd.f32 %v250_v54, %v248_v56 }
 0x1c3   :  { %254 = vst [vmem:[%s533_s6] sm:$0xff] %v252_v57 }

</bundles_post_ra>
